<compile_context>
chip_gen: v7x
topology: tpu7x:2x2x1
jax: 0.10.0
libtpu: 0.0.40
codegen_flags: <defaults>
</compile_context>

<pallas_src>
import functools

import jax
import jax.numpy as jnp
from jax.experimental import pallas as pl
from jax.experimental.pallas import tpu as pltpu


def _round_up(n, m):
    return ((n + m - 1) // m) * m


def _vmem_budgets():
    """Generation-aware (pipeline-buffer budget, compiler vmem limit) in bytes."""
    try:
        cap = int(pltpu.get_tpu_info().vmem_capacity_bytes)
    except Exception:  # interpret mode / query failure: assume v7x (64 MiB/TC)
        cap = 64 * 1024 * 1024
    # Leave headroom for Mosaic internal scratch and compiler temporaries:
    # v7x (64 MiB)  -> limit 40 MiB, buffer budget 28 MiB
    # v5e/v6e (128) -> limit 96 MiB, buffer budget 67 MiB
    limit = max(16 * 1024 * 1024, min(int(cap * 0.75), cap - 24 * 1024 * 1024))
    budget = int(limit * 0.7)
    return budget, limit


# ----------------------------- kernels --------------------------------------

def _ffn_kernel_aligned(x_ref, w1_ref, b1_ref, w2_ref, b2_ref, o_ref):
    """H is a multiple of 128: fully lane-dense, no padding anywhere."""
    x = x_ref[...]                                            # (tm, H) io dtype
    h = jnp.dot(x.astype(w1_ref.dtype), w1_ref[...],
                preferred_element_type=jnp.float32)
    h = jnp.maximum(h + b1_ref[...], 0.0)                     # bias + ReLU (f32)
    y = jnp.dot(h.astype(w2_ref.dtype), w2_ref[...],
                preferred_element_type=jnp.float32)
    # fold bias2 + residual in f32, cast once on store
    o_ref[...] = (y + b2_ref[...] + x.astype(jnp.float32)).astype(o_ref.dtype)


def _ffn_kernel_padded(H, x_ref, w1_ref, b1_ref, w2_ref, b2_ref, o_ref, xp_ref):
    """H % 128 != 0: lane-pad the x tile in VMEM so both MXU ops stay aligned.

    Padded weight rows/cols are zero and xp's pad lanes are zeroed every step,
    so the pad lanes contribute exactly zero to both matmuls."""
    x = x_ref[...]                                            # (tm, H) io dtype
    xp_ref[...] = jnp.zeros_like(xp_ref)                      # zero pad lanes
    xp_ref[:, :H] = x.astype(xp_ref.dtype)
    h = jnp.dot(xp_ref[...], w1_ref[...],
                preferred_element_type=jnp.float32)           # (tm, Hl) f32
    h = jnp.maximum(h + b1_ref[...], 0.0)
    y = jnp.dot(h.astype(w2_ref.dtype), w2_ref[...],
                preferred_element_type=jnp.float32) + b2_ref[...]
    o_ref[...] = (y[:, :H] + x.astype(jnp.float32)).astype(o_ref.dtype)


# ----------------------------- wrapper ---------------------------------------

def prepare_ffn_params(w1, b1, w2, b2, *, compute_dtype=jnp.bfloat16):
    """Hoisted (per-parameter-set, not per-call) weight reformatting.

    w1, w2: Conv1d(H, H, kernel_size=1) weights with the kernel dim squeezed,
    i.e. shape (H_out, H_in).  Returns W^T cast to bf16 and biases in f32,
    zero-padded to a lane-dense Hl = round_up(H, 128)."""
    H = w1.shape[0]
    Hl = _round_up(H, 128)

    def wt(w):
        return jnp.pad(jnp.asarray(w).T.astype(compute_dtype),
                       ((0, Hl - H), (0, Hl - H)))

    def br(b):
        return jnp.pad(jnp.asarray(b).astype(jnp.float32),
                       (0, Hl - H)).reshape(1, Hl)

    return wt(w1), br(b1), wt(w2), br(b2)


def pointwise_feedforward(x, params, *, tm_target=2048, min_grid_steps=2):
    """x: (B, L, H) in f32 or bf16; params: output of prepare_ffn_params.

    Returns relu(x @ W1^T + b1) @ W2^T + b2 + x with shape (B, L, H), dtype of x.
    """
    w1t, b1r, w2t, b2r = params
    B, L, H = x.shape
    M = B * L
    Hl = w1t.shape[0]
    assert w1t.shape == w2t.shape == (Hl, Hl) and Hl == _round_up(H, 128)
    needs_pad = (Hl != H)
    compute_dtype = w1t.dtype

    budget, vmem_limit = _vmem_budgets()
    io_bytes = jnp.dtype(x.dtype).itemsize
    cw_bytes = jnp.dtype(compute_dtype).itemsize

    # Resident operands (constant index_map): single-buffer them only when the
    # saving matters (large H); at Hl=128 the default double-buffer is noise.
    use_single_buffer = Hl >= 512
    resident_kw = {"pipeline_mode": pl.Buffered(1)} if use_single_buffer else {}
    n_wbuf = 1 if use_single_buffer else 2
    weight_vmem = n_wbuf * (2 * Hl * Hl * cw_bytes + 2 * Hl * 4)

    # Per-row VMEM: double-buffered in/out row tiles plus in-kernel
    # intermediates (xp bf16, h f32, h bf16 cast, y f32, residual f32)
    # ~ 16 B per row per lane-padded column.
    per_row = 2 * 2 * H * io_bytes + Hl * 16
    avail = max(budget - weight_vmem, 8 * per_row)
    tm_cap = max(8, (avail // per_row) // 8 * 8)

    tm = min(int(tm_target), int(tm_cap))
    # Give the parallel row grid >= min_grid_steps steps when there is enough
    # work: v7x shards it across its 2 TensorCores; one extra grid step is
    # ~0.35 us of overhead elsewhere.
    if M > min_grid_steps * 128:
        tm = min(tm, _round_up(pl.cdiv(M, min_grid_steps), 128))
    elif M >= 8:
        tm = min(tm, _round_up(M, 8))
    else:
        tm = M                                  # tiny input: one full-dim block
    if tm >= 128:
        tm = (tm // 128) * 128                  # MXU/sublane-friendly row tiles
    grid_m = pl.cdiv(M, tm)

    x2d = x.reshape(M, H)                       # row-major flatten: no data move

    in_specs = [
        pl.BlockSpec((tm, H), lambda i: (i, 0)),                   # x row tile
        pl.BlockSpec((Hl, Hl), lambda i: (0, 0), **resident_kw),   # W1^T
        pl.BlockSpec((1, Hl), lambda i: (0, 0), **resident_kw),    # b1
        pl.BlockSpec((Hl, Hl), lambda i: (0, 0), **resident_kw),   # W2^T
        pl.BlockSpec((1, Hl), lambda i: (0, 0), **resident_kw),    # b2
    ]
    out_spec = pl.BlockSpec((tm, H), lambda i: (i, 0))

    if needs_pad:
        kernel = functools.partial(_ffn_kernel_padded, H)
        scratch = [pltpu.VMEM((tm, Hl), compute_dtype)]
    else:
        kernel = _ffn_kernel_aligned
        scratch = []

    out = pl.pallas_call(
        kernel,
        out_shape=jax.ShapeDtypeStruct((M, H), x.dtype),
        grid_spec=pltpu.PrefetchScalarGridSpec(
            num_scalar_prefetch=0,
            grid=(grid_m,),
            in_specs=in_specs,
            out_specs=out_spec,
            scratch_shapes=scratch,
        ),
        compiler_params=pltpu.CompilerParams(
            dimension_semantics=("parallel",),
            vmem_limit_bytes=vmem_limit),
    )(x2d, w1t, b1r, w2t, b2r)

    return out.reshape(B, L, H)


# ----------------------------- references / tests ----------------------------

def reference_f32(x, w1, b1, w2, b2):
    xf = x.astype(jnp.float32)
    h = jnp.maximum(jnp.einsum("blh,oh->blo", xf, w1.astype(jnp.float32)) + b1, 0.0)
    return jnp.einsum("blh,oh->blo", h, w2.astype(jnp.float32)) + b2 + xf


def reference_bf16(x, w1, b1, w2, b2):
    # Mirrors the kernel arithmetic: bf16 MXU operands, f32 accumulation,
    # f32 bias / ReLU / residual.
    bf = jnp.bfloat16
    h = jnp.einsum("blh,oh->blo", x.astype(bf), w1.astype(bf),
                   preferred_element_type=jnp.float32) + b1.astype(jnp.float32)
    h = jnp.maximum(h, 0.0)
    y = jnp.einsum("blh,oh->blo", h.astype(bf), w2.astype(bf),
                   preferred_element_type=jnp.float32) + b2.astype(jnp.float32)
    return y + x.astype(jnp.float32)


def _make_inputs(key, B, L, H):
    kx, k1, k2, k3, k4 = jax.random.split(key, 5)
    x = jax.random.normal(kx, (B, L, H), dtype=jnp.float32)
    # Conv1d(H, H, kernel_size=1) weights: (H_out, H_in, 1) with kernel dim squeezed.
    scale = 1.0 / jnp.sqrt(H)
    w1 = jax.random.uniform(k1, (H, H), jnp.float32, -scale, scale)
    b1 = jax.random.uniform(k2, (H,), jnp.float32, -scale, scale)
    w2 = jax.random.uniform(k3, (H, H), jnp.float32, -scale, scale)
    b2 = jax.random.uniform(k4, (H,), jnp.float32, -scale, scale)
    return x, w1, b1, w2, b2


if __name__ == "__main__":
    key = jax.random.PRNGKey(0)
    k_a, k_b, k_c = jax.random.split(key, 3)

    # Case 1: small SASRec-like shape; H=32 exercises the in-VMEM lane-pad path.
    x, w1, b1, w2, b2 = _make_inputs(k_a, 2, 8, 32)
    params = prepare_ffn_params(w1, b1, w2, b2)
    out = jax.block_until_ready(pointwise_feedforward(x, params))
    assert out.shape == x.shape and out.dtype == x.dtype
    assert jnp.allclose(out, reference_bf16(x, w1, b1, w2, b2),
                        atol=2e-3, rtol=2e-3), "case1: mismatch vs bf16 reference"
    assert jnp.allclose(out, reference_f32(x, w1, b1, w2, b2),
                        atol=5e-2, rtol=5e-2), "case1: mismatch vs f32 reference"

    # Case 2: non-multiple H=50 plus a ragged multi-step parallel row grid (M=600).
    x, w1, b1, w2, b2 = _make_inputs(k_b, 2, 300, 50)
    params = prepare_ffn_params(w1, b1, w2, b2)
    out = jax.block_until_ready(pointwise_feedforward(x, params, tm_target=2048))
    assert out.shape == x.shape
    assert jnp.allclose(out, reference_bf16(x, w1, b1, w2, b2),
                        atol=2e-3, rtol=2e-3), "case2: mismatch vs bf16 reference"
    assert jnp.allclose(out, reference_f32(x, w1, b1, w2, b2),
                        atol=5e-2, rtol=5e-2), "case2: mismatch vs f32 reference"

    # Case 3: lane-aligned H=128 with bf16 streaming I/O (halves HBM traffic).
    x, w1, b1, w2, b2 = _make_inputs(k_c, 2, 64, 128)
    xb = x.astype(jnp.bfloat16)
    params = prepare_ffn_params(w1, b1, w2, b2)
    out = jax.block_until_ready(pointwise_feedforward(xb, params))
    assert out.shape == x.shape and out.dtype == jnp.bfloat16
    ref = reference_bf16(xb, w1, b1, w2, b2).astype(jnp.bfloat16)
    assert jnp.allclose(out.astype(jnp.float32), ref.astype(jnp.float32),
                        atol=5e-2, rtol=5e-2), "case3: mismatch vs bf16 reference"

    print("KERNEL_OK")
</pallas_src>

<mosaic_0001>
module attributes {stable_mosaic.version = 11 : i64} {
  func.func @_ffn_kernel_padded(%arg0: i32, %arg1: memref<16x32xf32, #tpu.memory_space<vmem>>, %arg2: memref<128x128xbf16, #tpu.memory_space<vmem>>, %arg3: memref<1x128xf32, #tpu.memory_space<vmem>>, %arg4: memref<128x128xbf16, #tpu.memory_space<vmem>>, %arg5: memref<1x128xf32, #tpu.memory_space<vmem>>, %arg6: memref<16x32xf32, #tpu.memory_space<vmem>>, %arg7: memref<16x128xbf16, #tpu.memory_space<vmem>>) attributes {dimension_semantics = [#tpu.dimension_semantics<parallel>], iteration_bounds = array<i64: 1>, scalar_prefetch = 0 : i64, scratch_operands = 1 : i64, tpu.core_type = #tpu.core_type<tc>, window_params = [{transform_indices = @transform_0, window_bounds = array<i64: 16, 32>}, {pipeline_mode = #tpu.pipeline_mode<synchronous>, transform_indices = @transform_1, window_bounds = array<i64: 128, 128>}, {pipeline_mode = #tpu.pipeline_mode<synchronous>, transform_indices = @transform_2, window_bounds = array<i64: 1, 128>}, {pipeline_mode = #tpu.pipeline_mode<synchronous>, transform_indices = @transform_3, window_bounds = array<i64: 128, 128>}, {pipeline_mode = #tpu.pipeline_mode<synchronous>, transform_indices = @transform_4, window_bounds = array<i64: 1, 128>}, {transform_indices = @transform_5, window_bounds = array<i64: 16, 32>}]} {
    %c0 = arith.constant 0 : index
    %c0_0 = arith.constant 0 : index
    %0 = vector.load %arg1[%c0, %c0_0] : memref<16x32xf32, #tpu.memory_space<vmem>>, vector<16x32xf32>
    %cst = arith.constant 0.000000e+00 : bf16
    %1 = vector.broadcast %cst : bf16 to vector<16x128xbf16>
    %c0_1 = arith.constant 0 : index
    %c0_2 = arith.constant 0 : index
    %2 = vector.load %arg7[%c0_1, %c0_2] : memref<16x128xbf16, #tpu.memory_space<vmem>>, vector<16x128xbf16>
    tpu.vector_store %arg7[%c0_1, %c0_2], %1 {strides = array<i32>} : memref<16x128xbf16, #tpu.memory_space<vmem>>, vector<16x128xbf16>,
    %3 = arith.truncf %0 : vector<16x32xf32> to vector<16x32xbf16>
    %c0_3 = arith.constant 0 : index
    %c0_4 = arith.constant 0 : index
    %4 = vector.load %arg7[%c0_3, %c0_4] : memref<16x128xbf16, #tpu.memory_space<vmem>>, vector<16x32xbf16>
    tpu.vector_store %arg7[%c0_3, %c0_4], %3 {strides = array<i32>} : memref<16x128xbf16, #tpu.memory_space<vmem>>, vector<16x32xbf16>,
    %c0_5 = arith.constant 0 : index
    %c0_6 = arith.constant 0 : index
    %5 = vector.load %arg7[%c0_5, %c0_6] : memref<16x128xbf16, #tpu.memory_space<vmem>>, vector<16x128xbf16>
    %c0_7 = arith.constant 0 : index
    %c0_8 = arith.constant 0 : index
    %6 = vector.load %arg2[%c0_7, %c0_8] : memref<128x128xbf16, #tpu.memory_space<vmem>>, vector<128x128xbf16>
    %cst_9 = arith.constant dense<0.000000e+00> : vector<16x128xf32>
    %7 = tpu.matmul %5, %6, %cst_9 {dimension_numbers = #tpu.dot_dimension_numbers<[1], [0], [0], [1], [0, 0, 1, 1], [], []>} : vector<16x128xbf16>, vector<128x128xbf16>, vector<16x128xf32> -> vector<16x128xf32>
    %c0_10 = arith.constant 0 : index
    %c0_11 = arith.constant 0 : index
    %8 = vector.load %arg3[%c0_10, %c0_11] : memref<1x128xf32, #tpu.memory_space<vmem>>, vector<1x128xf32>
    %9 = vector.broadcast %8 : vector<1x128xf32> to vector<16x128xf32>
    %10 = arith.addf %7, %9 : vector<16x128xf32>
    %cst_12 = arith.constant 0.000000e+00 : f32
    %11 = vector.broadcast %cst_12 : f32 to vector<16x128xf32>
    %12 = arith.maximumf %10, %11 : vector<16x128xf32>
    %13 = arith.truncf %12 : vector<16x128xf32> to vector<16x128xbf16>
    %c0_13 = arith.constant 0 : index
    %c0_14 = arith.constant 0 : index
    %14 = vector.load %arg4[%c0_13, %c0_14] : memref<128x128xbf16, #tpu.memory_space<vmem>>, vector<128x128xbf16>
    %cst_15 = arith.constant dense<0.000000e+00> : vector<16x128xf32>
    %15 = tpu.matmul %13, %14, %cst_15 {dimension_numbers = #tpu.dot_dimension_numbers<[1], [0], [0], [1], [0, 0, 1, 1], [], []>} : vector<16x128xbf16>, vector<128x128xbf16>, vector<16x128xf32> -> vector<16x128xf32>
    %c0_16 = arith.constant 0 : index
    %c0_17 = arith.constant 0 : index
    %16 = vector.load %arg5[%c0_16, %c0_17] : memref<1x128xf32, #tpu.memory_space<vmem>>, vector<1x128xf32>
    %17 = vector.broadcast %16 : vector<1x128xf32> to vector<16x128xf32>
    %18 = arith.addf %15, %17 : vector<16x128xf32>
    %19 = vector.extract_strided_slice %18 {offsets = [0, 0], sizes = [16, 32], strides = [1, 1]} : vector<16x128xf32> to vector<16x32xf32>
    %20 = arith.addf %19, %0 : vector<16x32xf32>
    %c0_18 = arith.constant 0 : index
    %c0_19 = arith.constant 0 : index
    %21 = vector.load %arg6[%c0_18, %c0_19] : memref<16x32xf32, #tpu.memory_space<vmem>>, vector<16x32xf32>
    tpu.vector_store %arg6[%c0_18, %c0_19], %20 {strides = array<i32>} : memref<16x32xf32, #tpu.memory_space<vmem>>, vector<16x32xf32>,
    return
  }
  func.func @transform_0(%arg0: i32) -> (i32, i32) {
    %c0_i32 = arith.constant 0 : i32
    %c0_i32_0 = arith.constant 0 : i32
    return %arg0, %c0_i32 : i32, i32
  }
  func.func @transform_1(%arg0: i32) -> (i32, i32) {
    %c0_i32 = arith.constant 0 : i32
    %c0_i32_0 = arith.constant 0 : i32
    %c0_i32_1 = arith.constant 0 : i32
    return %c0_i32, %c0_i32_0 : i32, i32
  }
  func.func @transform_2(%arg0: i32) -> (i32, i32) {
    %c0_i32 = arith.constant 0 : i32
    %c0_i32_0 = arith.constant 0 : i32
    %c0_i32_1 = arith.constant 0 : i32
    return %c0_i32, %c0_i32_0 : i32, i32
  }
  func.func @transform_3(%arg0: i32) -> (i32, i32) {
    %c0_i32 = arith.constant 0 : i32
    %c0_i32_0 = arith.constant 0 : i32
    %c0_i32_1 = arith.constant 0 : i32
    return %c0_i32, %c0_i32_0 : i32, i32
  }
  func.func @transform_4(%arg0: i32) -> (i32, i32) {
    %c0_i32 = arith.constant 0 : i32
    %c0_i32_0 = arith.constant 0 : i32
    %c0_i32_1 = arith.constant 0 : i32
    return %c0_i32, %c0_i32_0 : i32, i32
  }
  func.func @transform_5(%arg0: i32) -> (i32, i32) {
    %c0_i32 = arith.constant 0 : i32
    %c0_i32_0 = arith.constant 0 : i32
    return %arg0, %c0_i32 : i32, i32
  }
}

</mosaic_0001>

<bundles_post_ra>
// kernel: tpu_custom_call.1
= control target key start
LH: loop header
LB: loop body
LE: loop exit
PB: predicated region body
PF: predicated region fallthrough
CT: control target
= control target key end

     0   :  { %10 = vsyncpa [#allocation4], 0  ;;  %s634_s0 = inlined_call_operand.hbm [shape: f32[16,32], index: 0, kind: input, shape index: {}]   ;;  %s635_s1 = inlined_call_operand.hbm [shape: bf16[128,128], index: 1, kind: input, shape index: {}]   ;;  %s636_s2 = inlined_call_operand.vmem [shape: f32[1,128], index: 2, kind: input, shape index: {}]   ;;  %s637_s3 = inlined_call_operand.hbm [shape: bf16[128,128], index: 3, kind: input, shape index: {}]   ;;  %s638_s4 = inlined_call_operand.vmem [shape: f32[1,128], index: 4, kind: input, shape index: {}]   ;;  %s639_s5 = inlined_call_operand.hbm [shape: f32[16,32], index: 5, kind: output, shape index: {}]  }
   0x1   :  { %11 = vsyncpa [#allocation7], 0 }
   0x2   :  { %12 = vsyncpa [#allocation5], 0  ;;  %s516_s18 = smov [#allocation6]   ;;  %s422_s22 = scalar_lea.hbm %s635_s1, 1024 }
   0x3   :  { %s30_s19 = sshll.u32 %s516_s18, 4  ;;  %p423_p0 = scmp.ne.s32.totalorder %s635_s1, %s422_s22  ;;  %s31_s19 = int_to_ptr.vmem [resolvable:$true] %s30_s19 }
   0x4   :  { %p426_p1 = scmp.lt.u32.totalorder %s422_s22, %s635_s1 }
   0x6   :  { %p428_p2 = pnand %p426_p1, %p423_p0 }
   0x8   :  { %431 = shalt.err (!%p428_p2)
}
   0x9   :  { %s432_s27 = scalar_lea.vmem %s31_s19, 1024  ;;  %p437_p4 = scmp.lt.s32.totalorder %s31_s19, %s31_s19 }
   0xa   :  { %p433_p3 = scmp.ne.s32.totalorder %s31_s19, %s432_s27  ;;  %p438_p5 = scmp.lt.s32.totalorder %s432_s27, %s432_s27 }
   0xc   :  { %p439_p6 = por %p438_p5, %p437_p4 }
   0xe   :  { %p440_p7 = pnand %p439_p6, %p433_p3 }
  0x10   :  { %443 = shalt.err (!%p440_p7)
}
  0x11   :  { %s517_s28 = smov 64   ;;  %s518_s29 = smov 4  }
  0x12   :  { %36 = dma.hbm_to_vmem [thread:$0]  %s635_s1, 1024, %s31_s19, [#allocation7], %s517_s28, %s517_s28, %s518_s29  }
  0x13   :  { %s519_s7 = smov [#allocation3]   ;;  %s444_s11 = scalar_lea.hbm %s634_s0, 256 }
  0x14   :  { %s18_s8 = sshll.u32 %s519_s7, 4  ;;  %p445_p8 = scmp.ne.s32.totalorder %s634_s0, %s444_s11  ;;  %s19_s8 = int_to_ptr.vmem [resolvable:$true] %s18_s8 }
  0x15   :  { %p448_p9 = scmp.lt.u32.totalorder %s444_s11, %s634_s0 }
  0x17   :  { %p450_p10 = pnand %p448_p9, %p445_p8 }
  0x19   :  { %453 = shalt.err (!%p450_p10)
}
  0x1a   :  { %s454_s16 = scalar_lea.vmem %s19_s8, 256  ;;  %p459_p12 = scmp.lt.s32.totalorder %s19_s8, %s19_s8 }
  0x1b   :  { %p455_p11 = scmp.ne.s32.totalorder %s19_s8, %s454_s16  ;;  %p460_p13 = scmp.lt.s32.totalorder %s454_s16, %s454_s16 }
  0x1d   :  { %p461_p0 = por %p460_p13, %p459_p12 }
  0x1f   :  { %p462_p1 = pnand %p461_p0, %p455_p11 }
  0x21   :  { %465 = shalt.err (!%p462_p1)
}
  0x22   :  { %s520_s1 = smov 128   ;;  %s521_s17 = smov 8  }
  0x23   :  { %24 = dma.hbm_to_vmem [thread:$0]  %s634_s0, 256, %s19_s8, [#allocation4], %s520_s1, %s520_s1, %s521_s17  }
  0x24   :  { %s522_s20 = smov [#allocation8]   ;;  %s466_s24 = scalar_lea.hbm %s637_s3, 1024 }
  0x25   :  { %s44_s21 = sshll.u32 %s522_s20, 4  ;;  %p467_p2 = scmp.ne.s32.totalorder %s637_s3, %s466_s24  ;;  %s45_s21 = int_to_ptr.vmem [resolvable:$true] %s44_s21 }
  0x26   :  { %p470_p3 = scmp.lt.u32.totalorder %s466_s24, %s637_s3 }
  0x28   :  { %p472_p4 = pnand %p470_p3, %p467_p2 }
  0x2a   :  { %475 = shalt.err (!%p472_p4)
}
  0x2b   :  { %s476_s6 = scalar_lea.vmem %s45_s21, 1024  ;;  %p481_p6 = scmp.lt.s32.totalorder %s45_s21, %s45_s21 }
  0x2c   :  { %p477_p5 = scmp.ne.s32.totalorder %s45_s21, %s476_s6  ;;  %p482_p7 = scmp.lt.s32.totalorder %s476_s6, %s476_s6 }
  0x2e   :  { %p483_p8 = por %p482_p7, %p481_p6 }
  0x30   :  { %p484_p9 = pnand %p483_p8, %p477_p5 }
  0x32   :  { %487 = shalt.err (!%p484_p9)
}
  0x33   :  { %50 = dma.hbm_to_vmem [thread:$0]  %s637_s3, 1024, %s45_s21, [#allocation7], %s517_s28, %s517_s28, %s518_s29  }
  0x34   :  { %510 = dma.done.wait [#allocation4], 256  }
  0x35   :  { %511 = vsyncadd [#allocation4], 4294967040 }
  0x36   :  { %512 = dma.done.wait [#allocation7], 2048  }
  0x37   :  { %513 = vsyncadd [#allocation7], 4294965248  ;;  %v523_v0 = vmov 0.0   ;;  %vm524_vm0 = vmmov 0   ;;  %v525_v1 = vmov 0   ;;  %v406_v2 = vld [vmem:[#allocation6] sm:$0xff]  }
  0x38   :  { %355 = vmatprep.subr.bf16.mxu0 %v523_v0  ;;  %371 = vmatprep.mubr.msk.bf16.mxu0 %vm524_vm0, %v523_v0  ;;  %65 = vst [vmem:[#allocation2] sm:$0xff] %v525_v1  ;;  %v407_v3 = vld [vmem:[#allocation6 + $0x8] sm:$0xff]   ;;  %v408_v4 = vld [vmem:[#allocation6 + $0x10] sm:$0xff]   ;;  %v604_v6 = vld [vmem:[#allocation3 + $0x8] sm:$0xff]  ;;  %vm67_vm1 = vcmask 261120   ;;  %s526_s9 = smov [#allocation9]  }
  0x39   :  { %375 = vmatprep.subr.bf16.mxu1 %v523_v0  ;;  %391 = vmatprep.mubr.msk.bf16.mxu1 %vm524_vm0, %v523_v0  ;;  %v602_v5 = vld [vmem:[#allocation3] sm:$0xff]  ;;  %v414_v8 = vld [vmem:[#allocation8] sm:$0xff]   ;;  %v409_v9 = vld [vmem:[#allocation6 + $0x18] sm:$0xff]  }
  0x3a   :  { %356 = vmatpush3.bf16.msra.mxu0 %v406_v2  ;;  %v66_v7 = vpack.c.bf16 %v604_v6, %v602_v5  ;;  %376 = vmatpush3.bf16.msra.mxu1 %v414_v8  ;;  %v415_v10 = vld [vmem:[#allocation8 + $0x8] sm:$0xff]   ;;  %v410_v11 = vld [vmem:[#allocation6 + $0x20] sm:$0xff]   ;;  %v416_v12 = vld [vmem:[#allocation8 + $0x10] sm:$0xff]  }
  0x3b   :  { %357 = vmatprep.subr.bf16.mxu0 %v523_v0  ;;  %377 = vmatprep.subr.bf16.mxu1 %v523_v0  ;;  %v411_v13 = vld [vmem:[#allocation6 + $0x28] sm:$0xff]   ;;  %v417_v14 = vld [vmem:[#allocation8 + $0x18] sm:$0xff]   ;;  %v412_v15 = vld [vmem:[#allocation6 + $0x30] sm:$0xff]  }
  0x3c   :  { %68 = vst.msk [vmem:[#allocation2] sm:$0xff] %vm67_vm1, %v66_v7  ;;  %v418_v16 = vld [vmem:[#allocation8 + $0x20] sm:$0xff]   ;;  %v413_v17 = vld [vmem:[#allocation6 + $0x38] sm:$0xff]   ;;  %v419_v18 = vld [vmem:[#allocation8 + $0x28] sm:$0xff]  }
  0x3d   :  { %v420_v20 = vld [vmem:[#allocation8 + $0x30] sm:$0xff]   ;;  %v421_v21 = vld [vmem:[#allocation8 + $0x38] sm:$0xff]   ;;  %v319_v22 = vld [vmem:[%s636_s2] ss:$0 sm:$0xff]  ;;  %s306_s2 = sshll.u32 %s526_s9, 4  ;;  %s307_s2 = int_to_ptr.vmem [resolvable:$true] %s306_s2 }
  0x3e   :  { %358 = vmatpush3.bf16.msra.mxu0 %v407_v3  ;;  %378 = vmatpush3.bf16.msra.mxu1 %v415_v10  ;;  %v328_v32 = vld [vmem:[%s638_s4] ss:$0 sm:$0xff]  ;;  %s488_s10 = scalar_lea.vmem %s307_s2, 256  ;;  %p493_p11 = scmp.lt.s32.totalorder %s307_s2, %s307_s2 }
  0x3f   :  { %359 = vmatprep.subr.bf16.mxu0 %v523_v0  ;;  %379 = vmatprep.subr.bf16.mxu1 %v523_v0  ;;  %p489_p10 = scmp.ne.s32.totalorder %s307_s2, %s488_s10  ;;  %p494_p12 = scmp.lt.s32.totalorder %s488_s10, %s488_s10 }
  0x41   :  { %p495_p13 = por %p494_p12, %p493_p11 }
  0x42   :  { %360 = vmatpush3.bf16.msra.mxu0 %v408_v4  ;;  %380 = vmatpush3.bf16.msra.mxu1 %v416_v12 }
  0x43   :  { %361 = vmatprep.subr.bf16.mxu0 %v523_v0  ;;  %381 = vmatprep.subr.bf16.mxu1 %v523_v0  ;;  %v69_v19 = vld [vmem:[#allocation2] sm:$0xff]  ;;  %p496_p0 = pnand %p495_p13, %p489_p10 }
  0x46   :  { %362 = vmatpush3.bf16.msra.mxu0 %v409_v9  ;;  %382 = vmatpush3.bf16.msra.mxu1 %v417_v14 }
  0x47   :  { %363 = vmatprep.subr.bf16.mxu0 %v523_v0  ;;  %383 = vmatprep.subr.bf16.mxu1 %v523_v0 }
  0x4a   :  { %364 = vmatpush3.bf16.msra.mxu0 %v410_v11  ;;  %384 = vmatpush3.bf16.msra.mxu1 %v418_v16 }
  0x4b   :  { %365 = vmatprep.subr.bf16.mxu0 %v523_v0  ;;  %385 = vmatprep.subr.bf16.mxu1 %v523_v0 }
  0x4e   :  { %366 = vmatpush3.bf16.msra.mxu0 %v411_v13  ;;  %386 = vmatpush3.bf16.msra.mxu1 %v419_v18 }
  0x4f   :  { %367 = vmatprep.subr.bf16.mxu0 %v523_v0  ;;  %387 = vmatprep.subr.bf16.mxu1 %v523_v0 }
  0x52   :  { %368 = vmatpush3.bf16.msra.mxu0 %v412_v15  ;;  %388 = vmatpush3.bf16.msra.mxu1 %v420_v20 }
  0x53   :  { %369 = vmatprep.subr.bf16.mxu0 %v523_v0  ;;  %389 = vmatprep.subr.bf16.mxu1 %v523_v0 }
  0x56   :  { %370 = vmatpush3.bf16.msra.mxu0 %v413_v17  ;;  %390 = vmatpush3.bf16.msra.mxu1 %v421_v21 }
  0x59   :  { %372 = vmatmul.mubr.bf16.vlgmr.msra.gmra.mrb[0].mxu0 %v69_v19 }
 0x12c   :  { %v175_v23 = vpop.f32.mrb[0].mxu0 }
 0x12d   :  { %v176_v24 = vadd.f32 %v319_v22, %v175_v23  ;;  %v373_v25 = vpop.f32.mrb[1].mxu0 }
 0x12e   :  { %v178_v26 = vpop.f32.mrb[2].mxu0 }
 0x12f   :  { %v179_v27 = vadd.f32 %v319_v22, %v178_v26  ;;  %v374_v28 = vpop.f32.mrb[3].mxu0  ;;  %v182_v29 = vmax.f32 %v176_v24, 0.0 }
 0x131   :  { %v183_v30 = vmax.f32 %v179_v27, 0.0 }
 0x133   :  { %v184_v31 = vpack.c.bf16 %v183_v30, %v182_v29 }
 0x135   :  { %392 = vmatmul.mubr.bf16.vlgmr.msra.gmra.mrb[0].mxu1 %v184_v31 }
 0x208   :  { %v290_v33 = vpop.f32.mrb[0].mxu1 }
 0x209   :  { %v291_v34 = vadd.f32 %v328_v32, %v290_v33  ;;  %v393_v35 = vpop.f32.mrb[1].mxu1 }
 0x20a   :  { %v293_v36 = vpop.f32.mrb[2].mxu1 }
 0x20b   :  { %v297_v37 = vadd.f32 %v291_v34, %v602_v5  ;;  %v294_v38 = vadd.f32 %v328_v32, %v293_v36  ;;  %v394_v39 = vpop.f32.mrb[3].mxu1 }
 0x20d   :  { %299 = vst.msk [vmem:[#allocation9] sm:$0xff] %vm67_vm1, %v297_v37  ;;  %v298_v40 = vadd.f32 %v294_v38, %v604_v6 }
 0x20f   :  { %300 = vst.msk [vmem:[#allocation9 + $0x8] sm:$0xff] %vm67_vm1, %v298_v40 }
 0x210   :  { %499 = shalt.err (!%p496_p0)
}
 0x211   :  { %s500_s12 = scalar_lea.hbm %s639_s5, 256 }
 0x212   :  { %p501_p1 = scmp.ne.s32.totalorder %s639_s5, %s500_s12  ;;  %p504_p2 = scmp.lt.u32.totalorder %s500_s12, %s639_s5 }
 0x214   :  { %p506_p3 = pnand %p504_p2, %p501_p1 }
 0x216   :  { %509 = shalt.err (!%p506_p3)
}
 0x217   :  { %312 = dma.vmem_to_hbm [thread:$0]  %s307_s2, 256, %s639_s5, [#allocation5], %s520_s1, %s520_s1, %s521_s17  }
 0x218   :  { %514 = dma.done.wait [#allocation5], 256  }
 0x219   :  { %515 = vsyncadd [#allocation5], 4294967040 }
 0x21a   :  { %316 = vsyncpa [#allocation4], 1 }
 0x21b   :  { %317 = vsyncpa [#allocation7], 1 }
 0x21c   :  { %318 = vsyncpa [#allocation5], 1 }

</bundles_post_ra>
